<compile_context>
chip_gen: v6e
topology: v6e:2x2x1
jax: 0.10.0
libtpu: 0.0.40
codegen_flags: <defaults>
</compile_context>

<pallas_src>
import functools

import jax
import jax.numpy as jnp
from jax.experimental import pallas as pl
from jax.experimental.pallas import tpu as pltpu


def _round_up(x, m):
    return (x + m - 1) // m * m


# ----------------------------------------------------------------------------- kernels


def _hop_kernel(a_ref, x_ref, nrow_ref, o_ref, acc_ref, *, tk, resident_x):
    """One propagation hop.  x already carries this hop's inner D^-1/2 scale; the
    finalize also folds the *next* hop's inner scale, so the body is just bf16
    A @ x with f32 accumulation."""
    kk = pl.program_id(1)

    @pl.when(kk == 0)
    def _():
        acc_ref[...] = jnp.zeros_like(acc_ref)

    if resident_x:
        start = pl.multiple_of(kk * tk, tk)
        x = x_ref[pl.ds(start, tk), :]        # slice of the VMEM-resident carrier
    else:
        x = x_ref[...]                        # streamed fallback
    acc_ref[...] += jnp.dot(a_ref[...], x, preferred_element_type=jnp.float32)

    @pl.when(kk == pl.num_programs(1) - 1)
    def _():
        n = nrow_ref[...]
        # outer D^-1/2 of this hop  *  inner D^-1/2 of the next hop, emitted bf16
        o_ref[...] = (acc_ref[...] * (n * n)).astype(o_ref.dtype)


def _hop_head_kernel(a_ref, x_ref, nrow_ref, w1_ref, b1_ref, w2_ref, b2_ref,
                     o_ref, acc_ref, *, tk, resident_x):
    """Final hop with the MLP head fused into the finalize step (bf16 operands,
    f32 accumulation)."""
    kk = pl.program_id(1)

    @pl.when(kk == 0)
    def _():
        acc_ref[...] = jnp.zeros_like(acc_ref)

    if resident_x:
        start = pl.multiple_of(kk * tk, tk)
        x = x_ref[pl.ds(start, tk), :]
    else:
        x = x_ref[...]
    acc_ref[...] += jnp.dot(a_ref[...], x, preferred_element_type=jnp.float32)

    @pl.when(kk == pl.num_programs(1) - 1)
    def _():
        feat = (acc_ref[...] * nrow_ref[...]).astype(jnp.bfloat16)  # outer D^-1/2
        # TODO(synk): JJ_Norm(labels, times, num_time, num_label, split) has no
        # definition in the reference module; treated as identity here.
        h = jnp.dot(feat, w1_ref[...], preferred_element_type=jnp.float32) + b1_ref[...]
        h = jnp.maximum(h, 0.0).astype(jnp.bfloat16)
        h = jnp.dot(h, w2_ref[...], preferred_element_type=jnp.float32) + b2_ref[...]
        o_ref[...] = jax.nn.sigmoid(h)


# ----------------------------------------------------------------------------- wrapper


def sgc2onv_jj_forward(adj, feat, w1, b1, w2, b2, *, k=1):
    """adj: (N,N) dense 0/1 adjacency (A[i,j]=1 iff edge j->i), feat: (N,F_in),
    w1: (F_in,H), b1: (1,H), w2: (H,F_out), b2: (1,F_out). Returns (N, F_out) f32."""
    assert k >= 1, "k >= 1 required (module default is k=1)"
    N, in_feats = feat.shape
    hid_feats = w1.shape[1]
    out_feats = w2.shape[1]

    # ---- padding (zero padding is exact for this math) ------------------------
    N_pad = _round_up(N, 128)
    n512 = _round_up(N, 512)
    if n512 * n512 <= int(1.3 * N_pad * N_pad):
        N_pad = n512                    # buy large tiles for awkward N when cheap
    F_pad = _round_up(in_feats, 128)
    H_pad = _round_up(hid_feats, 128)
    O_pad = _round_up(out_feats, 128)

    # ---- tile / residency selection (budget leaves headroom on v7x's 64 MiB) --
    budget = 40 * 1024 * 1024
    resident_x = (N_pad * F_pad * 2) <= budget // 3

    def _vmem_need(tm, tk):
        x_b = N_pad * F_pad * 2 if resident_x else 2 * tk * F_pad * 2
        return (2 * tm * tk * 2                       # A tiles, double-buffered bf16
                + x_b                                  # feature carrier
                + tm * F_pad * 4                       # f32 accumulator
                + 2 * tm * max(F_pad * 2, O_pad * 4)   # output blocks
                + 2 * (F_pad * H_pad + H_pad * O_pad) * 2   # head weights (bf16)
                + 2 * (H_pad + O_pad) * 4 + 2 * tm * 4)     # biases + norm

    # >= 2 row tiles so the "parallel" axis feeds both TensorCores on v7x.
    tm_cands = [t for t in (2048, 1024, 512, 256, 128, 64)
                if N_pad % t == 0 and N_pad // t >= 2]
    tk_cands = [t for t in (1024, 512, 256, 128) if N_pad % t == 0]
    TM, TK = tm_cands[-1], tk_cands[-1]
    for tm in tm_cands:
        fitting = [tk for tk in tk_cands if _vmem_need(tm, tk) <= budget]
        if fitting:
            TM, TK = tm, fitting[0]
            break
    grid = (N_pad // TM, N_pad // TK)
    vmem_limit = int(min(64 * 1024 * 1024,
                         max(32 * 1024 * 1024, 1.5 * _vmem_need(TM, TK))))

    # ---- degree / norm from the exact f32 adjacency, off the kernel path ------
    adj_f32 = adj.astype(jnp.float32)
    deg = jnp.maximum(jnp.sum(adj_f32, axis=1, keepdims=True), 1.0)
    norm = jax.lax.rsqrt(deg)  # (N, 1)

    # ---- zero-pad and down-cast once in the wrapper ---------------------------
    adj_p = jnp.zeros((N_pad, N_pad), jnp.bfloat16).at[:N, :N].set(
        adj_f32.astype(jnp.bfloat16))
    # feature carrier: bf16 with the first hop's inner D^-1/2 pre-folded
    x_p = jnp.zeros((N_pad, F_pad), jnp.bfloat16).at[:N, :in_feats].set(
        (feat.astype(jnp.float32) * norm).astype(jnp.bfloat16))
    norm_p = jnp.ones((N_pad, 1), jnp.float32).at[:N, :].set(norm)
    w1_p = jnp.zeros((F_pad, H_pad), jnp.bfloat16).at[:in_feats, :hid_feats].set(
        w1.astype(jnp.bfloat16))
    b1_p = jnp.zeros((1, H_pad), jnp.float32).at[:, :hid_feats].set(b1)
    w2_p = jnp.zeros((H_pad, O_pad), jnp.bfloat16).at[:hid_feats, :out_feats].set(
        w2.astype(jnp.bfloat16))
    b2_p = jnp.zeros((1, O_pad), jnp.float32).at[:, :out_feats].set(b2)

    # ---- specs -----------------------------------------------------------------
    a_spec = pl.BlockSpec((TM, TK), lambda i, kk: (i, kk))
    if resident_x:
        # grid-invariant full block: DMA'd once, stays VMEM-resident, sliced in-kernel
        x_spec = pl.BlockSpec((N_pad, F_pad), lambda i, kk: (0, 0))
    else:
        x_spec = pl.BlockSpec((TK, F_pad), lambda i, kk: (kk, 0))   # streamed fallback
    nrow_spec = pl.BlockSpec((TM, 1), lambda i, kk: (i, 0))

    def full(shape):
        return pl.BlockSpec(shape, lambda i, kk: (0, 0))

    cparams = pltpu.CompilerParams(
        dimension_semantics=("parallel", "arbitrary"),
        vmem_limit_bytes=vmem_limit)

    x_read_bytes = (N_pad * F_pad * 2 if resident_x
                    else (N_pad // TM) * N_pad * F_pad * 2)

    # ---- (k-1) plain propagation hops ------------------------------------------
    hop = pl.pallas_call(
        functools.partial(_hop_kernel, tk=TK, resident_x=resident_x),
        out_shape=jax.ShapeDtypeStruct((N_pad, F_pad), jnp.bfloat16),
        grid=grid,
        in_specs=[a_spec, x_spec, nrow_spec],
        out_specs=pl.BlockSpec((TM, F_pad), lambda i, kk: (i, 0)),
        scratch_shapes=[pltpu.VMEM((TM, F_pad), jnp.float32)],
        compiler_params=cparams,
        cost_estimate=pl.CostEstimate(
            flops=2 * N_pad * N_pad * F_pad,
            transcendentals=0,
            bytes_accessed=N_pad * N_pad * 2 + x_read_bytes
                           + N_pad * F_pad * 2 + N_pad * 4),
    )
    for _ in range(k - 1):
        x_p = hop(adj_p, x_p, norm_p)

    # ---- final hop with fused MLP head ------------------------------------------
    out_p = pl.pallas_call(
        functools.partial(_hop_head_kernel, tk=TK, resident_x=resident_x),
        out_shape=jax.ShapeDtypeStruct((N_pad, O_pad), jnp.float32),
        grid=grid,
        in_specs=[a_spec, x_spec, nrow_spec,
                  full((F_pad, H_pad)), full((1, H_pad)),
                  full((H_pad, O_pad)), full((1, O_pad))],
        out_specs=pl.BlockSpec((TM, O_pad), lambda i, kk: (i, 0)),
        scratch_shapes=[pltpu.VMEM((TM, F_pad), jnp.float32)],
        compiler_params=cparams,
        cost_estimate=pl.CostEstimate(
            flops=2 * N_pad * N_pad * F_pad
                  + 2 * N_pad * F_pad * H_pad + 2 * N_pad * H_pad * O_pad,
            transcendentals=N_pad * O_pad,
            bytes_accessed=N_pad * N_pad * 2 + x_read_bytes + N_pad * O_pad * 4
                           + F_pad * H_pad * 2 + H_pad * O_pad * 2
                           + (H_pad + O_pad) * 4 + N_pad * 4),
    )(adj_p, x_p, norm_p, w1_p, b1_p, w2_p, b2_p)

    return out_p[:N, :out_feats]


# ----------------------------------------------------------------------------- reference & demo


def _reference(adj, feat, w1, b1, w2, b2, k):
    adj = adj.astype(jnp.float32)
    deg = jnp.maximum(jnp.sum(adj, axis=1, keepdims=True), 1.0)
    norm = jax.lax.rsqrt(deg)
    h = feat.astype(jnp.float32)
    for _ in range(k):
        h = norm * (adj @ (norm * h))
    h = jnp.maximum(h @ w1 + b1, 0.0)
    return jax.nn.sigmoid(h @ w2 + b2)


def _xavier_uniform(key, torch_shape):
    # torch nn.init.xavier_uniform_ on weight of shape (fan_out, fan_in)
    fan_out, fan_in = torch_shape
    bound = (6.0 / (fan_in + fan_out)) ** 0.5
    return jax.random.uniform(key, torch_shape, jnp.float32, -bound, bound)


if __name__ == "__main__":
    N, IN_FEATS, HID_FEATS, OUT_FEATS, K = 16, 8, 32, 4, 2

    key = jax.random.PRNGKey(0)
    k_adj, k_feat, k_w1, k_w2 = jax.random.split(key, 4)

    # deterministic random directed graph; add self-loops so no 0-in-degree nodes
    adj = (jax.random.uniform(k_adj, (N, N)) < 0.3).astype(jnp.float32)
    adj = jnp.maximum(adj, jnp.eye(N, dtype=jnp.float32))

    feat = jax.random.normal(k_feat, (N, IN_FEATS), dtype=jnp.float32)

    # parameters: xavier_uniform weights (torch layout (out,in) -> transposed),
    # zero biases — matching reset_parameters()
    w1_torch = _xavier_uniform(k_w1, (HID_FEATS, IN_FEATS))
    w2_torch = _xavier_uniform(k_w2, (OUT_FEATS, HID_FEATS))
    w1 = jnp.transpose(w1_torch)                       # (IN, HID)
    b1 = jnp.zeros((1, HID_FEATS), jnp.float32)
    w2 = jnp.transpose(w2_torch)                       # (HID, OUT)
    b2 = jnp.zeros((1, OUT_FEATS), jnp.float32)

    out = sgc2onv_jj_forward(adj, feat, w1, b1, w2, b2, k=K)
    out = jax.block_until_ready(out)

    ref = _reference(adj, feat, w1, b1, w2, b2, K)
    assert out.shape == (N, OUT_FEATS) and out.dtype == jnp.float32
    max_err = float(jnp.max(jnp.abs(out - ref)))
    assert max_err < 3e-2, f"mismatch vs pure-JAX reference: {max_err}"
    print("KERNEL_OK")
</pallas_src>

<mosaic_0001>
module attributes {stable_mosaic.version = 11 : i64} {
  func.func @_hop_kernel(%arg0: i32, %arg1: i32, %arg2: memref<64x128xbf16, #tpu.memory_space<vmem>>, %arg3: memref<128x128xbf16, #tpu.memory_space<vmem>>, %arg4: memref<64x1xf32, #tpu.memory_space<vmem>>, %arg5: memref<64x128xbf16, #tpu.memory_space<vmem>>, %arg6: memref<64x128xf32, #tpu.memory_space<vmem>>) attributes {dimension_semantics = [#tpu.dimension_semantics<parallel>, #tpu.dimension_semantics<arbitrary>], iteration_bounds = array<i64: 2, 1>, scalar_prefetch = 0 : i64, scratch_operands = 1 : i64, tpu.core_type = #tpu.core_type<tc>, window_params = [{transform_indices = @transform_0, window_bounds = array<i64: 64, 128>}, {pipeline_mode = #tpu.pipeline_mode<synchronous>, transform_indices = @transform_1, window_bounds = array<i64: 128, 128>}, {transform_indices = @transform_2, window_bounds = array<i64: 64, 1>}, {transform_indices = @transform_3, window_bounds = array<i64: 64, 128>}]} {
    %c0_i32 = arith.constant 0 : i32
    %0 = arith.cmpi eq, %arg1, %c0_i32 : i32
    %1 = arith.extui %0 : i1 to i32
    %c0_i32_0 = arith.constant 0 : i32
    %2 = arith.cmpi ne, %1, %c0_i32_0 : i32
    scf.if %2 {
      %cst_9 = arith.constant 0.000000e+00 : f32
      %15 = vector.broadcast %cst_9 : f32 to vector<64x128xf32>
      %c0_10 = arith.constant 0 : index
      %c0_11 = arith.constant 0 : index
      %16 = vector.load %arg6[%c0_10, %c0_11] : memref<64x128xf32, #tpu.memory_space<vmem>>, vector<64x128xf32>
      tpu.vector_store %arg6[%c0_10, %c0_11], %15 {strides = array<i32>} : memref<64x128xf32, #tpu.memory_space<vmem>>, vector<64x128xf32>,
    } else {
    }
    %c128_i32 = arith.constant 128 : i32
    %3 = arith.muli %arg1, %c128_i32 : i32
    %4 = tpu.assume_multiple %3, 128 : i32
    %5 = arith.index_cast %4 : i32 to index
    %c0 = arith.constant 0 : index
    %6 = vector.load %arg3[%5, %c0] : memref<128x128xbf16, #tpu.memory_space<vmem>>, vector<128x128xbf16>
    %c0_1 = arith.constant 0 : index
    %c0_2 = arith.constant 0 : index
    %7 = vector.load %arg6[%c0_1, %c0_2] : memref<64x128xf32, #tpu.memory_space<vmem>>, vector<64x128xf32>
    %c0_3 = arith.constant 0 : index
    %c0_4 = arith.constant 0 : index
    %8 = vector.load %arg2[%c0_3, %c0_4] : memref<64x128xbf16, #tpu.memory_space<vmem>>, vector<64x128xbf16>
    %cst = arith.constant dense<0.000000e+00> : vector<64x128xf32>
    %9 = tpu.matmul %8, %6, %cst {dimension_numbers = #tpu.dot_dimension_numbers<[1], [0], [0], [1], [0, 0, 1, 1], [], []>} : vector<64x128xbf16>, vector<128x128xbf16>, vector<64x128xf32> -> vector<64x128xf32>
    %10 = arith.addf %7, %9 : vector<64x128xf32>
    %c0_5 = arith.constant 0 : index
    %c0_6 = arith.constant 0 : index
    %11 = vector.load %arg6[%c0_5, %c0_6] : memref<64x128xf32, #tpu.memory_space<vmem>>, vector<64x128xf32>
    tpu.vector_store %arg6[%c0_5, %c0_6], %10 {strides = array<i32>} : memref<64x128xf32, #tpu.memory_space<vmem>>, vector<64x128xf32>,
    %c0_i32_7 = arith.constant 0 : i32
    %12 = arith.cmpi eq, %arg1, %c0_i32_7 : i32
    %13 = arith.extui %12 : i1 to i32
    %c0_i32_8 = arith.constant 0 : i32
    %14 = arith.cmpi ne, %13, %c0_i32_8 : i32
    scf.if %14 {
      %c0_9 = arith.constant 0 : index
      %c0_10 = arith.constant 0 : index
      %15 = vector.load %arg4[%c0_9, %c0_10] : memref<64x1xf32, #tpu.memory_space<vmem>>, vector<64x1xf32>
      %c0_11 = arith.constant 0 : index
      %c0_12 = arith.constant 0 : index
      %16 = vector.load %arg6[%c0_11, %c0_12] : memref<64x128xf32, #tpu.memory_space<vmem>>, vector<64x128xf32>
      %17 = arith.mulf %15, %15 : vector<64x1xf32>
      %18 = vector.broadcast %17 : vector<64x1xf32> to vector<64x128xf32>
      %19 = arith.mulf %16, %18 : vector<64x128xf32>
      %20 = arith.truncf %19 : vector<64x128xf32> to vector<64x128xbf16>
      %c0_13 = arith.constant 0 : index
      %c0_14 = arith.constant 0 : index
      %21 = vector.load %arg5[%c0_13, %c0_14] : memref<64x128xbf16, #tpu.memory_space<vmem>>, vector<64x128xbf16>
      tpu.vector_store %arg5[%c0_13, %c0_14], %20 {strides = array<i32>} : memref<64x128xbf16, #tpu.memory_space<vmem>>, vector<64x128xbf16>,
    } else {
    }
    return
  }
  func.func @transform_0(%arg0: i32, %arg1: i32) -> (i32, i32) {
    %c0_i32 = arith.constant 0 : i32
    return %arg0, %arg1 : i32, i32
  }
  func.func @transform_1(%arg0: i32, %arg1: i32) -> (i32, i32) {
    %c0_i32 = arith.constant 0 : i32
    %c0_i32_0 = arith.constant 0 : i32
    %c0_i32_1 = arith.constant 0 : i32
    return %c0_i32, %c0_i32_0 : i32, i32
  }
  func.func @transform_2(%arg0: i32, %arg1: i32) -> (i32, i32) {
    %c0_i32 = arith.constant 0 : i32
    %c0_i32_0 = arith.constant 0 : i32
    return %arg0, %c0_i32 : i32, i32
  }
  func.func @transform_3(%arg0: i32, %arg1: i32) -> (i32, i32) {
    %c0_i32 = arith.constant 0 : i32
    %c0_i32_0 = arith.constant 0 : i32
    return %arg0, %c0_i32 : i32, i32
  }
}

</mosaic_0001>

<bundles_post_ra>
// kernel: tpu_custom_call.1
= control target key start
LH: loop header
LB: loop body
LE: loop exit
PB: predicated region body
PF: predicated region fallthrough
CT: control target
= control target key end

     0   :  { %8 = vsyncpa [#allocation4], 0  ;;  %s1089_s0 = inlined_call_operand.vmem [shape: bf16[128,128], index: 0, kind: input, shape index: {}]   ;;  %s1090_s1 = inlined_call_operand.vmem [shape: bf16[128,128], index: 1, kind: input, shape index: {}]   ;;  %s1091_s2 = inlined_call_operand.vmem [shape: f32[128,1], index: 2, kind: input, shape index: {}]   ;;  %s1092_s3 = inlined_call_operand.hbm [shape: bf16[128,128], index: 3, kind: output, shape index: {}]  }
   0x1   :  { %10 = vsyncpa [#allocation4 + $0x1], 0  ;;  %s929_s12 = smov 0   ;;  %s931_s13 = smov 0  }
   0x2   :  { %s933_s14 = smov 0   ;;  %s935_s15 = smov 0  }
   0x3   :  { %s937_s16 = smov 0   ;;  %s939_s17 = smov 0  }
   0x4 LB: > { %s636_s18 = sadd.s32 4294967295, %s903_s17   ;;  %s637_s19 = sadd.s32 4294967294, %s903_s17   ;;  %s903_s17 = sphi %s939_s17, %s16_s17   ;;  %s899_s16 = sphi %s937_s16, %s1099_s16   ;;  %s895_s15 = sphi %s935_s15, %s1098_s15   ;;  %s891_s14 = sphi %s933_s14, %s1097_s14   ;;  %s887_s13 = sphi %s931_s13, %s1096_s13   ;;  %s883_s12 = sphi %s929_s12, %s1095_s12  }
   0x5   : > { %s28_s20 = sadd.s32 1, %s899_s16  ;;  %s110_s21 = sadd.s32 1, %s891_s14 }
   0x6   : > { %p30_p0 = scmp.ge.s32.totalorder %s28_s20, 2  ;;  %p120_p1 = scmp.ne.s32.totalorder %s891_s14, %s887_s13 }
   0x7   : > { %p121_p2 = scmp.eq.s32.totalorder %s636_s18, 1  ;;  %p126_p3 = scmp.ne.s32.totalorder %s887_s13, %s883_s12 }
   0x8   : > { %s1101_s20 = smov (%p30_p0, %s28_s20), 0  ;;  %p127_p5 = scmp.eq.s32.totalorder %s637_s19, 1 }
   0x9   : > { %p969_p4 = por %p121_p2, %p120_p1  ;;  %s107_s23 = ssub.s32 %s899_s16, %s1101_s20 }
   0xa   : > { %p640_p6 = scmp.ge.s32.totalorder %s903_s17, 1  ;;  %p108_p7 = scmp.eq.s32.totalorder %s107_s23, 0 }
   0xb   : > { %p976_p8 = por %p127_p5, %p126_p3  ;;  %p169_p9 = scmp.lt.s32.totalorder %s903_s17, 3 }
   0xc   : > { %s982_s25 = scalar_select %p108_p7, %s891_s14, %s110_s21  }
   0xd   : > { %p170_p10 = pnand %p640_p6, %p169_p9 }
   0xe   : > { %s642_s28 = sshll.u32 (!%p170_p10), %s895_s15, 3  ;;  %s198_s7 = sand.u32 (!%p170_p10), 1, %s887_s13  }
   0xf   : > { %173 = sbr.rel (%p170_p10) target bundleno = 270 (0x10e), region = 32  ;;  %p202_p11 = scmp.lt.s32.totalorder (!%p170_p10), %s642_s28, 15 }
  0x10   : > { %s641_s8 = sshll.u32 (!%p170_p10), %s198_s7, 5  ;;  %s679_s11 = sshll.u32 (!%p170_p10), %s895_s15, 9 }
  0x11   : > { %s1040_s21 = scalar_lea.hbm (!%p170_p10), %s1092_s3, %s679_s11  ;;  %s1044_s15 = scalar_lea.sflag (!%p170_p10), [#allocation4], %s198_s7 }
  0x12   : > { %s906_s26 = smov (!%p170_p10), [#allocation3]  }
  0x13   : > { %s831_s27 = sshll.u32 (!%p170_p10), %s906_s26, 4  ;;  %s832_s27 = int_to_ptr.vmem [resolvable:$false] %s831_s27 }
  0x14   : > { %v815_v0 = vld [vmem:[%s1090_s1 + $0x38] sm:$0xff]   ;;  %v816_v1 = vld [vmem:[%s1090_s1 + $0x30] sm:$0xff]   ;;  %s1103_s28 = smov (!%p202_p11, %s642_s28), 15  ;;  %v817_v2 = vld [vmem:[%s1090_s1 + $0x28] sm:$0xff]   ;;  %v905_v3 = vmov 0  }
  0x15   : > { %715 = vmatprep.subr.bf16.mxu0 %v815_v0  ;;  %739 = vmatprep.subr.bf16.mxu1 %v815_v0  ;;  %s643_s6 = sshll.u32 %s1103_s28, 2  ;;  %s645_s10 = sshll.u32 %s1103_s28, 3  ;;  %v818_v4 = vld [vmem:[%s1090_s1 + $0x20] sm:$0xff]   ;;  %v819_v7 = vld [vmem:[%s1090_s1 + $0x18] sm:$0xff]   ;;  %v820_v14 = vld [vmem:[%s1090_s1 + $0x10] sm:$0xff]  }
  0x16   : > { %716 = vmatpush3.bf16.msra.mxu0 %v815_v0  ;;  %747 = vmatpush3.bf16.msra.mxu1 %v815_v0  ;;  %s997_s9 = scalar_lea.vmem %s1089_s0, %s643_s6  ;;  %s1007_s23 = scalar_lea.vmem %s1091_s2, %s645_s10  ;;  %v821_v19 = vld [vmem:[%s1090_s1 + $0x8] sm:$0xff]   ;;  %v822_v24 = vld [vmem:[%s1090_s1] sm:$0xff]  }
  0x17   : > { %717 = vmatprep.subr.bf16.mxu0 %v816_v1  ;;  %740 = vmatprep.subr.bf16.mxu1 %v816_v1  ;;  %v823_v5 = vld [vmem:[%s997_s9] sm:$0xff]   ;;  %v824_v6 = vld [vmem:[%s997_s9 + $0x10] sm:$0xff]   ;;  %v426_v12 = vld [vmem:[%s1007_s23 + $0x18] sm:$0xff]  ;;  %s833_s28 = scalar_lea.vmem %s832_s27, 1024 }
  0x18   : > { %814 = vset.pattern.permute.xlu1 %v905_v3  ;;  %813 = vset.pattern.permute.xlu0 %v905_v3  ;;  %v425_v8 = vld [vmem:[%s1007_s23 + $0x10] sm:$0xff]  ;;  %v423_v9 = vld [vmem:[%s1007_s23] sm:$0xff]  ;;  %v424_v13 = vld [vmem:[%s1007_s23 + $0x8] sm:$0xff]  ;;  %v442_v15 = vmul.f32 %v426_v12, %v426_v12 }
  0x19   : > { %731 = vmatprep.mubr.bf16.mxu0 %v823_v5  ;;  %735 = vmatprep.mubr.bf16.mxu1 %v824_v6  ;;  %v441_v10 = vmul.f32 %v425_v8, %v425_v8  ;;  %v439_v11 = vmul.f32 %v423_v9, %v423_v9  ;;  %v440_v16 = vmul.f32 %v424_v13, %v424_v13  ;;  %v428_v17 = vld [vmem:[%s1007_s23 + $0x28] sm:$0xff]  ;;  %v427_v18 = vld [vmem:[%s1007_s23 + $0x20] sm:$0xff]  ;;  %v430_v22 = vld [vmem:[%s1007_s23 + $0x38] sm:$0xff] }
  0x1a   : > { %718 = vmatpush3.bf16.msra.mxu0 %v816_v1  ;;  %748 = vmatpush3.bf16.msra.mxu1 %v816_v1  ;;  %v444_v20 = vmul.f32 %v428_v17, %v428_v17  ;;  %v443_v21 = vmul.f32 %v427_v18, %v427_v18  ;;  %v429_v23 = vld [vmem:[%s1007_s23 + $0x30] sm:$0xff]  ;;  %v446_v25 = vmul.f32 %v430_v22, %v430_v22  ;;  %v825_v27 = vld [vmem:[%s997_s9 + $0x8] sm:$0xff]   ;;  %v826_v28 = vld [vmem:[%s997_s9 + $0x18] sm:$0xff]   ;;  %s200_s9 = scalar_lea.vmem [#allocation3], %s641_s8 }
  0x1b   : > { %719 = vmatprep.subr.bf16.mxu0 %v817_v2  ;;  %741 = vmatprep.subr.bf16.mxu1 %v817_v2  ;;  %v445_v26 = vmul.f32 %v429_v23, %v429_v23  ;;  %s549_s10 = sshll.u32 %s200_s9, 4  ;;  %s1035_s10 = int_to_ptr.vmem [resolvable:$true] %s549_s10 }
  0x1c   : > { %459 = vperm.xlu1 %814, %v441_v10   ;;  %449 = vperm.xlu0 %813, %v439_v11   ;;  %s827_s23 = scalar_lea.vmem %s1035_s10, 512  ;;  %p834_p1 = scmp.lt.s32.totalorder %s1035_s10, %s832_s27 }
  0x1d   : > { %p828_p12 = scmp.ne.s32.totalorder %s1035_s10, %s827_s23  ;;  %p835_p2 = scmp.lt.s32.totalorder %s833_s28, %s827_s23 }
  0x1e   : > { %720 = vmatpush3.bf16.msra.mxu0 %v817_v2  ;;  %749 = vmatpush3.bf16.msra.mxu1 %v817_v2 }
  0x1f   : > { %721 = vmatprep.subr.bf16.mxu0 %v818_v4  ;;  %742 = vmatprep.subr.bf16.mxu1 %v818_v4  ;;  %p829_p13 = pnand %p828_p12, %p969_p4  ;;  %p836_p3 = por %p835_p2, %p834_p1 }
  0x20   : > { %464 = vperm.xlu1 %814, %v442_v15   ;;  %454 = vperm.xlu0 %813, %v440_v16  }
  0x21   : > { %p830_p0 = pneg %p829_p13 }
  0x22   : > { %722 = vmatpush3.bf16.msra.mxu0 %v818_v4  ;;  %750 = vmatpush3.bf16.msra.mxu1 %v818_v4 }
  0x23   : > { %723 = vmatprep.subr.bf16.mxu0 %v819_v7  ;;  %743 = vmatprep.subr.bf16.mxu1 %v819_v7  ;;  %p837_p5 = pnand %p836_p3, %p830_p0 }
  0x24   : > { %474 = vperm.xlu1 %814, %v444_v20   ;;  %469 = vperm.xlu0 %813, %v443_v21  }
  0x26   : > { %724 = vmatpush3.bf16.msra.mxu0 %v819_v7  ;;  %751 = vmatpush3.bf16.msra.mxu1 %v819_v7 }
  0x27   : > { %725 = vmatprep.subr.bf16.mxu0 %v820_v14  ;;  %744 = vmatprep.subr.bf16.mxu1 %v820_v14 }
  0x28   : > { %484 = vperm.xlu1 %814, %v446_v25   ;;  %479 = vperm.xlu0 %813, %v445_v26  }
  0x2a   : > { %726 = vmatpush3.bf16.msra.mxu0 %v820_v14  ;;  %752 = vmatpush3.bf16.msra.mxu1 %v820_v14 }
  0x2b   : > { %727 = vmatprep.subr.bf16.mxu0 %v821_v19  ;;  %745 = vmatprep.subr.bf16.mxu1 %v821_v19 }
  0x2e   : > { %728 = vmatpush3.bf16.msra.mxu0 %v821_v19  ;;  %753 = vmatpush3.bf16.msra.mxu1 %v821_v19 }
  0x2f   : > { %729 = vmatprep.subr.bf16.mxu0 %v822_v24  ;;  %746 = vmatprep.subr.bf16.mxu1 %v822_v24 }
  0x32   : > { %730 = vmatpush3.bf16.msra.mxu0 %v822_v24  ;;  %754 = vmatpush3.bf16.msra.mxu1 %v822_v24 }
  0x35   : > { %732 = vmatmul.mubr.bf16.vlgmr.msra.gmra.mxu0 %v825_v27  ;;  %736 = vmatmul.mubr.bf16.vlgmr.msra.gmra.mxu1 %v826_v28 }
  0x97   : > { %v460_v29 = vpop.permute.xlu1 %459  ;;  %v450_v30 = vpop.permute.xlu0 %449 }
  0x9b   : > { %v465_v31 = vpop.permute.xlu1 %464  ;;  %v455_v32 = vpop.permute.xlu0 %454 }
  0x9f   : > { %v475_v33 = vpop.permute.xlu1 %474  ;;  %v470_v34 = vpop.permute.xlu0 %469 }
  0xa3   : > { %v485_v39 = vpop.permute.xlu1 %484  ;;  %v480_v40 = vpop.permute.xlu0 %479 }
  0xf5   : > { %v733_v35 = vpop.f32.mrf.mxu0  ;;  %v737_v36 = vpop.f32.mrf.mxu1 }
  0xf6   : > { %v489_v43 = vmul.f32 %v733_v35, %v460_v29  ;;  %v493_v44 = vmul.f32 %v737_v36, %v480_v40 }
  0xf7   : > { %v373_v37 = vpop.f32.mrf.mxu0  ;;  %v389_v38 = vpop.f32.mrf.mxu1 }
  0xf8   : > { %v487_v47 = vmul.f32 %v450_v30, %v373_v37  ;;  %v491_v48 = vmul.f32 %v470_v34, %v389_v38 }
  0xf9   : > { %v734_v41 = vpop.f32.mrf.mxu0  ;;  %v738_v42 = vpop.f32.mrf.mxu1 }
  0xfa   : > { %v490_v45 = vmul.f32 %v734_v41, %v465_v31  ;;  %v494_v46 = vmul.f32 %v738_v42, %v485_v39 }
  0xfb   : > { %v376_v49 = vpop.f32.mrf.mxu0  ;;  %v392_v50 = vpop.f32.mrf.mxu1 }
  0xfc   : > { %v688_v51 = vpack.c.bf16 %v490_v45, %v489_v43  ;;  %v698_v52 = vpack.c.bf16 %v494_v46, %v493_v44  ;;  %v488_v53 = vmul.f32 %v455_v32, %v376_v49  ;;  %v492_v54 = vmul.f32 %v475_v33, %v392_v50 }
  0xfe   : > { %700 = vst [vmem:[%s200_s9 + $0x8] sm:$0xff] %v688_v51   ;;  %702 = vst [vmem:[%s200_s9 + $0x18] sm:$0xff] %v698_v52   ;;  %v683_v55 = vpack.c.bf16 %v488_v53, %v487_v47  ;;  %v693_v56 = vpack.c.bf16 %v492_v54, %v491_v48 }
 0x100   : > { %684 = vst [vmem:[%s200_s9] sm:$0xff] %v683_v55   ;;  %701 = vst [vmem:[%s200_s9 + $0x10] sm:$0xff] %v693_v56  }
 0x101   : > { %840 = shalt.err (!%p837_p5)
}
 0x102   : > { %s841_s29 = scalar_lea.hbm %s1040_s21, 512  ;;  %s845_s5 = scalar_lea.hbm %s1092_s3, 1024 }
 0x103   : > { %p842_p6 = scmp.ne.s32.totalorder %s1040_s21, %s841_s29  ;;  %p846_p10 = scmp.lt.s32.totalorder %s1040_s21, %s1092_s3 }
 0x104   : > { %p847_p11 = scmp.lt.s32.totalorder %s845_s5, %s841_s29 }
 0x105   : > { %p843_p7 = pnand %p842_p6, %p969_p4 }
 0x106   : > { %p848_p12 = por %p847_p11, %p846_p10 }
 0x107   : > { %p844_p9 = pneg %p843_p7 }
 0x109   : > { %p849_p13 = pnand %p848_p12, %p844_p9 }
 0x10b   : > { %852 = shalt.err (!%p849_p13)
}
 0x10c   : > { %s907_s8 = smov 64   ;;  %s908_s9 = smov 4  }
 0x10d   : > { %755 = dma.vmem_to_hbm [thread:$0]  (%p969_p4), %s1035_s10, 512, %s1040_s21, %s1044_s15, %s907_s8, %s907_s8, %s908_s9  }
 0x10e PF: > { %p761_p0 = scmp.ge.s32.totalorder %s903_s17, 2  ;;  %s564_s11 = sand.u32 1, %s883_s12  }
 0x10f   : > { %s565_s18 = scalar_lea.sflag [#allocation4], %s564_s11 }
 0x110   : > { %p758_p1 = pnand %p761_p0, %p976_p8 }
 0x112   : > { %p759_p2 = pneg %p758_p1 }
 0x114   : > { %878 = dma.done.wait (%p759_p2), %s565_s18, 512  }
 0x115   : > { %880 = vsyncadd (%p759_p2), %s565_s18, 4294966784  ;;  %s16_s17 = sadd.s32 1, %s903_s17   ;;  %s1095_s12 = smov %s887_s13 }
 0x116   : > { %p13_p3 = scmp.ge.s32.totalorder %s16_s17, 4   ;;  %s1096_s13 = smov %s891_s14 }
 0x117   : > { %s1097_s14 = smov %s982_s25  ;;  %s1098_s15 = smov %s899_s16 }
 0x118   : > { %s1099_s16 = smov %s1101_s20  ;;  %15 = sbr.rel (!%p13_p3) target bundleno = 4 (0x4), region = 79 }
 0x11d   :  { %570 = vsyncpa [#allocation4], 1 }
 0x11e   :  { %572 = vsyncpa [#allocation4 + $0x1], 1 }

</bundles_post_ra>
